<compile_context>
chip_gen: v7x
topology: tpu7x:2x2x1
jax: 0.10.0
libtpu: 0.0.40
codegen_flags: <defaults>
</compile_context>

<pallas_src>
import jax
import jax.numpy as jnp
from jax.experimental import pallas as pl
from jax.experimental.pallas import tpu as pltpu


# ---- problem geometry --------------------------------------------------------
F_IN = 1000      # backbone feature dim (vgg16_bn output)
HID = 256        # fc1 hidden
O_OUT = 50       # num classes
O_PAD = 128      # lane-dense output width (unmasked stores); cols 50:128 are zero


def net_head_kernel(x_ref, w1_ref, b1_ref, w2_ref, b2_ref, o_ref):
    # fc1: Linear(1000 -> 256) + bias + ReLU.  bf16 operands on the MXU,
    # f32 accumulation; x's bf16 cast is fused here (no wrapper op).
    x = x_ref[...].astype(jnp.bfloat16)
    h = jnp.dot(x, w1_ref[...], preferred_element_type=jnp.float32)
    h = jnp.maximum(h + b1_ref[...], 0.0)
    # Dropout(0.5): identity in eval mode (inference forward pass).
    # fc2: Linear(256 -> 50), output padded to 128 lanes (zero columns).
    out = jnp.dot(h.astype(jnp.bfloat16), w2_ref[...],
                  preferred_element_type=jnp.float32)
    o_ref[...] = (out + b2_ref[...]).astype(o_ref.dtype)


def _vmem_limit_bytes(tb):
    # Double-buffered footprint of every block (+ 2 MiB compiler headroom).
    per_buf = (tb * F_IN * 4          # x block (f32)
               + F_IN * HID * 2       # w1 (bf16)
               + 8 * HID * 4          # b1 (sublane-padded f32)
               + HID * O_PAD * 2      # w2 (bf16)
               + 8 * O_PAD * 4        # b2 (sublane-padded f32)
               + tb * O_PAD * 4)      # out block (f32)
    return int(min(48 << 20, 2 * per_buf + (2 << 20)))


def net_head(x, w1_b, b1, w2_p, b2_p, *, batch_block=None, return_padded=False):
    """x: [B, 1000] f32 backbone features -> [B, 50] f32 logits.

    w1_b: [1000, 256] bf16
    b1:   [1, 256]    f32
    w2_p: [256, 128]  bf16 (zero-padded cols 50:128)
    b2_p: [1, 128]    f32  (zero-padded cols 50:128)

    batch_block: if set (multiple of 8 recommended; e.g. B // 2 on v7x when
      B >= 16), the batch is tiled along a parallel grid axis so rows shard
      across both v7x TensorCores while weights stay VMEM-resident.
    return_padded: return the lane-dense [B, 128] slab (cols 50:128 are 0)
      instead of slicing to [B, 50] — lets the consumer fold the slice.
    """
    B = x.shape[0]
    if batch_block is None or batch_block >= B:
        tb = B                                   # single full-array block
    else:
        tb = min(B, ((batch_block + 7) // 8) * 8)  # sublane-aligned batch tile
    nb = pl.cdiv(B, tb)

    flops = 2 * B * F_IN * HID + 2 * B * HID * O_PAD
    bytes_accessed = (B * F_IN * 4 + F_IN * HID * 2 + HID * 4
                      + HID * O_PAD * 2 + O_PAD * 4 + B * O_PAD * 4)

    out_padded = pl.pallas_call(
        net_head_kernel,
        out_shape=jax.ShapeDtypeStruct((B, O_PAD), jnp.float32),
        grid=(nb,),
        in_specs=[
            pl.BlockSpec((tb, F_IN), lambda i: (i, 0)),     # x rows per step
            pl.BlockSpec((F_IN, HID), lambda i: (0, 0)),    # w1: VMEM-resident
            pl.BlockSpec((1, HID), lambda i: (0, 0)),       # b1
            pl.BlockSpec((HID, O_PAD), lambda i: (0, 0)),   # w2
            pl.BlockSpec((1, O_PAD), lambda i: (0, 0)),     # b2
        ],
        out_specs=pl.BlockSpec((tb, O_PAD), lambda i: (i, 0)),
        compiler_params=pltpu.CompilerParams(
            dimension_semantics=("parallel",),
            vmem_limit_bytes=_vmem_limit_bytes(tb)),
        cost_estimate=pl.CostEstimate(
            flops=flops, transcendentals=0, bytes_accessed=bytes_accessed),
    )(x, w1_b, b1, w2_p, b2_p)

    if return_padded:
        return out_padded          # consumer must mask cols 50:128 (they are 0)
    return out_padded[:, :O_OUT]


def init_params(key, in_features=F_IN, hidden=HID, num_classes=O_OUT):
    """PyTorch nn.Linear-style init (U[-1/sqrt(fan_in), 1/sqrt(fan_in)]), f32,
    stored as [in, out] (transposed vs PyTorch's [out, in])."""
    k1, k2, k3, k4 = jax.random.split(key, 4)
    lim1 = 1.0 / jnp.sqrt(jnp.float32(in_features))
    lim2 = 1.0 / jnp.sqrt(jnp.float32(hidden))
    w1 = jax.random.uniform(k1, (in_features, hidden), jnp.float32, -lim1, lim1)
    b1 = jax.random.uniform(k2, (1, hidden), jnp.float32, -lim1, lim1)
    w2 = jax.random.uniform(k3, (hidden, num_classes), jnp.float32, -lim2, lim2)
    b2 = jax.random.uniform(k4, (1, num_classes), jnp.float32, -lim2, lim2)
    return w1, b1, w2, b2


def prepare_params(w1, b1, w2, b2):
    """One-time setup: cast weights to bf16; pad fc2 outputs 50 -> 128 lanes."""
    w1_b = w1.astype(jnp.bfloat16)
    w2_p = jnp.zeros((HID, O_PAD), jnp.bfloat16).at[:, :O_OUT].set(
        w2.astype(jnp.bfloat16))
    b2_p = jnp.zeros((1, O_PAD), jnp.float32).at[:, :O_OUT].set(b2)
    return w1_b, b1.astype(jnp.float32), w2_p, b2_p


if __name__ == "__main__":
    key = jax.random.PRNGKey(0)
    kx, kx2, kp = jax.random.split(key, 3)

    w1, b1, w2, b2 = init_params(kp)
    w1_b, b1_f, w2_p, b2_p = prepare_params(w1, b1, w2, b2)

    def ref_head(x):
        # pure-JAX reference with matching bf16 casts
        xb = x.astype(jnp.bfloat16).astype(jnp.float32)
        h = jnp.maximum(xb @ w1_b.astype(jnp.float32) + b1_f, 0.0)
        hb = h.astype(jnp.bfloat16).astype(jnp.float32)
        return hb @ w2_p.astype(jnp.float32)[:, :O_OUT] + b2_p[:, :O_OUT]

    # Path 1 (default): single full-array block, no wrapper-side pad/cast of x.
    # x stands in for the vgg16_bn backbone output (1000-dim features).
    B = 8
    x = jax.random.normal(kx, (B, F_IN), dtype=jnp.float32)
    out = jax.block_until_ready(net_head(x, w1_b, b1_f, w2_p, b2_p))
    assert out.shape == (B, O_OUT)
    assert jnp.allclose(out, ref_head(x), atol=1e-2, rtol=1e-2)

    # Path 2: batch-sharded parallel grid (the v7x two-TensorCore layout),
    # exercised at B = 16 with 8-row batch tiles.
    B2 = 16
    x2 = jax.random.normal(kx2, (B2, F_IN), dtype=jnp.float32)
    out2 = jax.block_until_ready(
        net_head(x2, w1_b, b1_f, w2_p, b2_p, batch_block=8))
    assert out2.shape == (B2, O_OUT)
    assert jnp.allclose(out2, ref_head(x2), atol=1e-2, rtol=1e-2)

    print("KERNEL_OK")
</pallas_src>

<mosaic_0001>
module attributes {stable_mosaic.version = 11 : i64} {
  func.func @net_head_kernel(%arg0: i32, %arg1: memref<8x1000xf32, #tpu.memory_space<vmem>>, %arg2: memref<1000x256xbf16, #tpu.memory_space<vmem>>, %arg3: memref<1x256xf32, #tpu.memory_space<vmem>>, %arg4: memref<256x128xbf16, #tpu.memory_space<vmem>>, %arg5: memref<1x128xf32, #tpu.memory_space<vmem>>, %arg6: memref<8x128xf32, #tpu.memory_space<vmem>>) attributes {dimension_semantics = [#tpu.dimension_semantics<parallel>], iteration_bounds = array<i64: 1>, scalar_prefetch = 0 : i64, scratch_operands = 0 : i64, tpu.core_type = #tpu.core_type<tc>, window_params = [{transform_indices = @transform_0, window_bounds = array<i64: 8, 1000>}, {pipeline_mode = #tpu.pipeline_mode<synchronous>, transform_indices = @transform_1, window_bounds = array<i64: 1000, 256>}, {pipeline_mode = #tpu.pipeline_mode<synchronous>, transform_indices = @transform_2, window_bounds = array<i64: 1, 256>}, {pipeline_mode = #tpu.pipeline_mode<synchronous>, transform_indices = @transform_3, window_bounds = array<i64: 256, 128>}, {pipeline_mode = #tpu.pipeline_mode<synchronous>, transform_indices = @transform_4, window_bounds = array<i64: 1, 128>}, {transform_indices = @transform_5, window_bounds = array<i64: 8, 128>}]} {
    %c0 = arith.constant 0 : index
    %c0_0 = arith.constant 0 : index
    %0 = vector.load %arg1[%c0, %c0_0] : memref<8x1000xf32, #tpu.memory_space<vmem>>, vector<8x1000xf32>
    %1 = arith.truncf %0 : vector<8x1000xf32> to vector<8x1000xbf16>
    %c0_1 = arith.constant 0 : index
    %c0_2 = arith.constant 0 : index
    %2 = vector.load %arg2[%c0_1, %c0_2] : memref<1000x256xbf16, #tpu.memory_space<vmem>>, vector<1000x256xbf16>
    %cst = arith.constant dense<0.000000e+00> : vector<8x256xf32>
    %3 = tpu.matmul %1, %2, %cst {dimension_numbers = #tpu.dot_dimension_numbers<[1], [0], [0], [1], [0, 0, 1, 1], [], []>} : vector<8x1000xbf16>, vector<1000x256xbf16>, vector<8x256xf32> -> vector<8x256xf32>
    %c0_3 = arith.constant 0 : index
    %c0_4 = arith.constant 0 : index
    %4 = vector.load %arg3[%c0_3, %c0_4] : memref<1x256xf32, #tpu.memory_space<vmem>>, vector<1x256xf32>
    %5 = vector.broadcast %4 : vector<1x256xf32> to vector<8x256xf32>
    %6 = arith.addf %3, %5 : vector<8x256xf32>
    %cst_5 = arith.constant 0.000000e+00 : f32
    %7 = vector.broadcast %cst_5 : f32 to vector<8x256xf32>
    %8 = arith.maximumf %6, %7 : vector<8x256xf32>
    %9 = arith.truncf %8 : vector<8x256xf32> to vector<8x256xbf16>
    %c0_6 = arith.constant 0 : index
    %c0_7 = arith.constant 0 : index
    %10 = vector.load %arg4[%c0_6, %c0_7] : memref<256x128xbf16, #tpu.memory_space<vmem>>, vector<256x128xbf16>
    %cst_8 = arith.constant dense<0.000000e+00> : vector<8x128xf32>
    %11 = tpu.matmul %9, %10, %cst_8 {dimension_numbers = #tpu.dot_dimension_numbers<[1], [0], [0], [1], [0, 0, 1, 1], [], []>} : vector<8x256xbf16>, vector<256x128xbf16>, vector<8x128xf32> -> vector<8x128xf32>
    %c0_9 = arith.constant 0 : index
    %c0_10 = arith.constant 0 : index
    %12 = vector.load %arg5[%c0_9, %c0_10] : memref<1x128xf32, #tpu.memory_space<vmem>>, vector<1x128xf32>
    %13 = vector.broadcast %12 : vector<1x128xf32> to vector<8x128xf32>
    %14 = arith.addf %11, %13 : vector<8x128xf32>
    %c0_11 = arith.constant 0 : index
    %c0_12 = arith.constant 0 : index
    %15 = vector.load %arg6[%c0_11, %c0_12] : memref<8x128xf32, #tpu.memory_space<vmem>>, vector<8x128xf32>
    tpu.vector_store %arg6[%c0_11, %c0_12], %14 {strides = array<i32>} : memref<8x128xf32, #tpu.memory_space<vmem>>, vector<8x128xf32>,
    return
  }
  func.func @transform_0(%arg0: i32) -> (i32, i32) {
    %c0_i32 = arith.constant 0 : i32
    %c0_i32_0 = arith.constant 0 : i32
    return %arg0, %c0_i32 : i32, i32
  }
  func.func @transform_1(%arg0: i32) -> (i32, i32) {
    %c0_i32 = arith.constant 0 : i32
    %c0_i32_0 = arith.constant 0 : i32
    %c0_i32_1 = arith.constant 0 : i32
    return %c0_i32, %c0_i32_0 : i32, i32
  }
  func.func @transform_2(%arg0: i32) -> (i32, i32) {
    %c0_i32 = arith.constant 0 : i32
    %c0_i32_0 = arith.constant 0 : i32
    %c0_i32_1 = arith.constant 0 : i32
    return %c0_i32, %c0_i32_0 : i32, i32
  }
  func.func @transform_3(%arg0: i32) -> (i32, i32) {
    %c0_i32 = arith.constant 0 : i32
    %c0_i32_0 = arith.constant 0 : i32
    %c0_i32_1 = arith.constant 0 : i32
    return %c0_i32, %c0_i32_0 : i32, i32
  }
  func.func @transform_4(%arg0: i32) -> (i32, i32) {
    %c0_i32 = arith.constant 0 : i32
    %c0_i32_0 = arith.constant 0 : i32
    %c0_i32_1 = arith.constant 0 : i32
    return %c0_i32, %c0_i32_0 : i32, i32
  }
  func.func @transform_5(%arg0: i32) -> (i32, i32) {
    %c0_i32 = arith.constant 0 : i32
    %c0_i32_0 = arith.constant 0 : i32
    return %arg0, %c0_i32 : i32, i32
  }
}

</mosaic_0001>

<bundles_post_ra>
// kernel: tpu_custom_call.1
= control target key start
LH: loop header
LB: loop body
LE: loop exit
PB: predicated region body
PF: predicated region fallthrough
CT: control target
= control target key end

     0   :  { %10 = vsyncpa [#allocation3], 0  ;;  %s1785_s0 = inlined_call_operand.hbm [shape: f32[8,1000], index: 0, kind: input, shape index: {}]   ;;  %s1786_s1 = inlined_call_operand.hbm [shape: bf16[1000,256], index: 1, kind: input, shape index: {}]   ;;  %s1787_s2 = inlined_call_operand.vmem [shape: f32[1,256], index: 2, kind: input, shape index: {}]   ;;  %s1788_s3 = inlined_call_operand.hbm [shape: bf16[256,128], index: 3, kind: input, shape index: {}]   ;;  %s1789_s4 = inlined_call_operand.vmem [shape: f32[1,128], index: 4, kind: input, shape index: {}]   ;;  %s1790_s5 = inlined_call_operand.hbm [shape: f32[8,128], index: 5, kind: output, shape index: {}]  }
   0x1   :  { %11 = vsyncpa [#allocation6], 0 }
   0x2   :  { %12 = vsyncpa [#allocation4], 0  ;;  %s1693_s18 = smov [#allocation5]   ;;  %s1599_s22 = scalar_lea.hbm %s1786_s1, 16000 }
   0x3   :  { %s28_s19 = sshll.u32 %s1693_s18, 4  ;;  %p1600_p0 = scmp.ne.s32.totalorder %s1786_s1, %s1599_s22  ;;  %s29_s19 = int_to_ptr.vmem [resolvable:$true] %s28_s19 }
   0x4   :  { %p1603_p1 = scmp.lt.u32.totalorder %s1599_s22, %s1786_s1 }
   0x6   :  { %p1605_p2 = pnand %p1603_p1, %p1600_p0 }
   0x8   :  { %1608 = shalt.err (!%p1605_p2)
}
   0x9   :  { %s1609_s27 = scalar_lea.vmem %s29_s19, 16000  ;;  %p1614_p4 = scmp.lt.s32.totalorder %s29_s19, %s29_s19 }
   0xa   :  { %p1610_p3 = scmp.ne.s32.totalorder %s29_s19, %s1609_s27  ;;  %p1615_p5 = scmp.lt.s32.totalorder %s1609_s27, %s1609_s27 }
   0xc   :  { %p1616_p6 = por %p1615_p5, %p1614_p4 }
   0xe   :  { %p1617_p7 = pnand %p1616_p6, %p1610_p3 }
  0x10   :  { %1620 = shalt.err (!%p1617_p7)
}
  0x11   :  { %s1694_s28 = smov 128   ;;  %s1695_s29 = smov 8  }
  0x12   :  { %34 = dma.hbm_to_vmem [thread:$0]  %s1786_s1, 16000, %s29_s19, [#allocation6], %s1694_s28, %s1694_s28, %s1695_s29  }
  0x13   :  { %s1696_s7 = smov [#allocation2]   ;;  %s1697_s9 = smov [#allocation7]  }
  0x14   :  { %s19_s8 = sshll.u32 %s1696_s7, 4  ;;  %s42_s10 = sshll.u32 %s1697_s9, 4  ;;  %s20_s8 = int_to_ptr.vmem [resolvable:$true] %s19_s8  ;;  %s43_s10 = int_to_ptr.vmem [resolvable:$true] %s42_s10 }
  0x15   :  { %s1621_s13 = scalar_lea.hbm %s1785_s0, 1024 }
  0x16   :  { %p1622_p8 = scmp.ne.s32.totalorder %s1785_s0, %s1621_s13  ;;  %p1625_p9 = scmp.lt.u32.totalorder %s1621_s13, %s1785_s0 }
  0x18   :  { %p1627_p10 = pnand %p1625_p9, %p1622_p8 }
  0x1a   :  { %1630 = shalt.err (!%p1627_p10)
}
  0x1b   :  { %s1631_s1 = scalar_lea.vmem %s20_s8, 1024  ;;  %p1636_p12 = scmp.lt.s32.totalorder %s20_s8, %s20_s8 }
  0x1c   :  { %p1632_p11 = scmp.ne.s32.totalorder %s20_s8, %s1631_s1  ;;  %p1637_p13 = scmp.lt.s32.totalorder %s1631_s1, %s1631_s1 }
  0x1e   :  { %p1638_p0 = por %p1637_p13, %p1636_p12 }
  0x20   :  { %p1639_p1 = pnand %p1638_p0, %p1632_p11 }
  0x22   :  { %1642 = shalt.err (!%p1639_p1)
}
  0x23   :  { %22 = dma.hbm_to_vmem [thread:$0]  %s1785_s0, 1024, %s20_s8, [#allocation3]  }
  0x24   :  { %s1643_s22 = scalar_lea.hbm %s1788_s3, 2048 }
  0x25   :  { %p1644_p2 = scmp.ne.s32.totalorder %s1788_s3, %s1643_s22  ;;  %p1647_p3 = scmp.lt.u32.totalorder %s1643_s22, %s1788_s3 }
  0x27   :  { %p1649_p4 = pnand %p1647_p3, %p1644_p2 }
  0x29   :  { %1652 = shalt.err (!%p1649_p4)
}
  0x2a   :  { %s1653_s27 = scalar_lea.vmem %s43_s10, 2048  ;;  %p1658_p6 = scmp.lt.s32.totalorder %s43_s10, %s43_s10 }
  0x2b   :  { %p1654_p5 = scmp.ne.s32.totalorder %s43_s10, %s1653_s27  ;;  %p1659_p7 = scmp.lt.s32.totalorder %s1653_s27, %s1653_s27 }
  0x2d   :  { %p1660_p8 = por %p1659_p7, %p1658_p6 }
  0x2f   :  { %p1661_p9 = pnand %p1660_p8, %p1654_p5 }
  0x31   :  { %1664 = shalt.err (!%p1661_p9)
}
  0x32   :  { %s1698_s0 = smov 64   ;;  %s1699_s28 = smov 4  }
  0x33   :  { %48 = dma.hbm_to_vmem [thread:$0]  %s1788_s3, 2048, %s43_s10, [#allocation6], %s1698_s0, %s1698_s0, %s1699_s28  }
  0x34   :  { %1687 = dma.done.wait [#allocation3], 1024  }
  0x35   :  { %1688 = vsyncadd [#allocation3], 4294966272 }
  0x36   :  { %1689 = dma.done.wait [#allocation6], 18048  }
  0x37   :  { %1690 = vsyncadd [#allocation6], 4294949248  ;;  %v1395_v0 = vld [vmem:[#allocation5 + $0x104] ss:$8 sps:$4 sm:$0xff]   ;;  %v1397_v1 = vld [vmem:[#allocation5 + $0x100] ss:$8 sps:$4 sm:$0xff]  }
  0x38   :  { %891 = vmatprep.subr.bf16.mxu0 %v1395_v0  ;;  %v1398_v2 = vld [vmem:[#allocation5 + $0x4] ss:$8 sps:$4 sm:$0xff]   ;;  %v1400_v3 = vld [vmem:[#allocation5] ss:$8 sps:$4 sm:$0xff]   ;;  %v1401_v4 = vld [vmem:[#allocation5 + $0x114] ss:$8 sps:$4 sm:$0xff]  }
  0x39   :  { %892 = vmatpush1.bf16.msra.mxu0 %v1397_v1  ;;  %v1403_v5 = vld [vmem:[#allocation5 + $0x110] ss:$8 sps:$4 sm:$0xff]   ;;  %850 = vmatprep.subr.bf16.mxu1 %v1398_v2  ;;  %v1404_v6 = vld [vmem:[#allocation5 + $0x14] ss:$8 sps:$4 sm:$0xff]   ;;  %v1407_v8 = vld [vmem:[#allocation5 + $0x124] ss:$8 sps:$4 sm:$0xff]  }
  0x3a   :  { %851 = vmatpush1.bf16.msra.mxu1 %v1400_v3  ;;  %893 = vmatprep.subr.bf16.mxu0 %v1401_v4  ;;  %v1406_v7 = vld [vmem:[#allocation5 + $0x10] ss:$8 sps:$4 sm:$0xff]   ;;  %v1409_v9 = vld [vmem:[#allocation5 + $0x120] ss:$8 sps:$4 sm:$0xff]   ;;  %v1410_v10 = vld [vmem:[#allocation5 + $0x24] ss:$8 sps:$4 sm:$0xff]  }
  0x3b   :  { %852 = vmatprep.subr.bf16.mxu1 %v1404_v6  ;;  %v1413_v11 = vld [vmem:[#allocation5 + $0x134] ss:$8 sps:$4 sm:$0xff]   ;;  %v1412_v12 = vld [vmem:[#allocation5 + $0x20] ss:$8 sps:$4 sm:$0xff]   ;;  %v1415_v14 = vld [vmem:[#allocation5 + $0x130] ss:$8 sps:$4 sm:$0xff]  }
  0x3c   :  { %v1416_v13 = vld [vmem:[#allocation5 + $0x34] ss:$8 sps:$4 sm:$0xff]   ;;  %v1419_v15 = vld [vmem:[#allocation5 + $0x144] ss:$8 sps:$4 sm:$0xff]   ;;  %v1418_v16 = vld [vmem:[#allocation5 + $0x30] ss:$8 sps:$4 sm:$0xff]  }
  0x3d   :  { %894 = vmatpush1.bf16.msra.mxu0 %v1403_v5  ;;  %v1422_v17 = vld [vmem:[#allocation5 + $0x44] ss:$8 sps:$4 sm:$0xff]   ;;  %v1421_v18 = vld [vmem:[#allocation5 + $0x140] ss:$8 sps:$4 sm:$0xff]   ;;  %v1425_v19 = vld [vmem:[#allocation5 + $0x154] ss:$8 sps:$4 sm:$0xff]  }
  0x3e   :  { %895 = vmatprep.subr.bf16.mxu0 %v1407_v8  ;;  %853 = vmatpush1.bf16.msra.mxu1 %v1406_v7  ;;  %v1424_v20 = vld [vmem:[#allocation5 + $0x40] ss:$8 sps:$4 sm:$0xff]   ;;  %v1428_v21 = vld [vmem:[#allocation5 + $0x54] ss:$8 sps:$4 sm:$0xff]   ;;  %v1427_v22 = vld [vmem:[#allocation5 + $0x150] ss:$8 sps:$4 sm:$0xff]  }
  0x3f   :  { %854 = vmatprep.subr.bf16.mxu1 %v1410_v10  ;;  %v1431_v23 = vld [vmem:[#allocation5 + $0x164] ss:$8 sps:$4 sm:$0xff]   ;;  %v1430_v24 = vld [vmem:[#allocation5 + $0x50] ss:$8 sps:$4 sm:$0xff]   ;;  %v1433_v26 = vld [vmem:[#allocation5 + $0x160] ss:$8 sps:$4 sm:$0xff]  }
  0x40   :  { %v1434_v25 = vld [vmem:[#allocation5 + $0x64] ss:$8 sps:$4 sm:$0xff]   ;;  %v1437_v27 = vld [vmem:[#allocation5 + $0x174] ss:$8 sps:$4 sm:$0xff]   ;;  %v1436_v28 = vld [vmem:[#allocation5 + $0x60] ss:$8 sps:$4 sm:$0xff]  }
  0x41   :  { %896 = vmatpush1.bf16.msra.mxu0 %v1409_v9  ;;  %v1440_v29 = vld [vmem:[#allocation5 + $0x74] ss:$8 sps:$4 sm:$0xff]   ;;  %v1439_v30 = vld [vmem:[#allocation5 + $0x170] ss:$8 sps:$4 sm:$0xff]   ;;  %v1443_v31 = vld [vmem:[#allocation5 + $0x184] ss:$8 sps:$4 sm:$0xff]  }
  0x42   :  { %897 = vmatprep.subr.bf16.mxu0 %v1413_v11  ;;  %855 = vmatpush1.bf16.msra.mxu1 %v1412_v12  ;;  %v1442_v32 = vld [vmem:[#allocation5 + $0x70] ss:$8 sps:$4 sm:$0xff]   ;;  %v1446_v33 = vld [vmem:[#allocation5 + $0x84] ss:$8 sps:$4 sm:$0xff]   ;;  %v1445_v34 = vld [vmem:[#allocation5 + $0x180] ss:$8 sps:$4 sm:$0xff]  }
  0x43   :  { %856 = vmatprep.subr.bf16.mxu1 %v1416_v13  ;;  %v1449_v35 = vld [vmem:[#allocation5 + $0x194] ss:$8 sps:$4 sm:$0xff]   ;;  %v1448_v36 = vld [vmem:[#allocation5 + $0x80] ss:$8 sps:$4 sm:$0xff]   ;;  %v1451_v38 = vld [vmem:[#allocation5 + $0x190] ss:$8 sps:$4 sm:$0xff]  }
  0x44   :  { %v1452_v37 = vld [vmem:[#allocation5 + $0x94] ss:$8 sps:$4 sm:$0xff]   ;;  %v1455_v39 = vld [vmem:[#allocation5 + $0x1a4] ss:$8 sps:$4 sm:$0xff]   ;;  %v1454_v40 = vld [vmem:[#allocation5 + $0x90] ss:$8 sps:$4 sm:$0xff]  }
  0x45   :  { %898 = vmatpush1.bf16.msra.mxu0 %v1415_v14  ;;  %v1458_v41 = vld [vmem:[#allocation5 + $0xa4] ss:$8 sps:$4 sm:$0xff]   ;;  %v1457_v42 = vld [vmem:[#allocation5 + $0x1a0] ss:$8 sps:$4 sm:$0xff]   ;;  %v1461_v43 = vld [vmem:[#allocation5 + $0x1b4] ss:$8 sps:$4 sm:$0xff]  }
  0x46   :  { %899 = vmatprep.subr.bf16.mxu0 %v1419_v15  ;;  %857 = vmatpush1.bf16.msra.mxu1 %v1418_v16  ;;  %v1460_v44 = vld [vmem:[#allocation5 + $0xa0] ss:$8 sps:$4 sm:$0xff]   ;;  %v1464_v45 = vld [vmem:[#allocation5 + $0xb4] ss:$8 sps:$4 sm:$0xff]   ;;  %v1463_v47 = vld [vmem:[#allocation5 + $0x1b0] ss:$8 sps:$4 sm:$0xff]  }
  0x47   :  { %858 = vmatprep.subr.bf16.mxu1 %v1422_v17  ;;  %v64_v46 = vld [vmem:[#allocation2 + $0x18] sm:$0xff]  ;;  %v1467_v49 = vld [vmem:[#allocation5 + $0x1c4] ss:$8 sps:$4 sm:$0xff]   ;;  %v1469_v54 = vld [vmem:[#allocation5 + $0x1c0] ss:$8 sps:$4 sm:$0xff]   ;;  %vm839_vm0 = vcmask 850944  }
  0x48   :  { %v72_v48 = vpack.c.bf16 %v64_v46, %v64_v46  ;;  %v62_v50 = vld [vmem:[#allocation2 + $0x8] sm:$0xff]  ;;  %v1466_v51 = vld [vmem:[#allocation5 + $0xb0] ss:$8 sps:$4 sm:$0xff]   ;;  %v1473_v55 = vld [vmem:[#allocation5 + $0x1d4] ss:$8 sps:$4 sm:$0xff]   ;;  %vm843_vm1 = vcmask 1043456  }
  0x49   :  { %900 = vmatpush1.bf16.msra.mxu0 %v1421_v18  ;;  %v70_v52 = vpack.c.bf16 %v62_v50, %v62_v50  ;;  %v1470_v53 = vld [vmem:[#allocation5 + $0xc4] ss:$8 sps:$4 sm:$0xff]   ;;  %v1472_v56 = vld [vmem:[#allocation5 + $0xc0] ss:$8 sps:$4 sm:$0xff]   ;;  %v1476_v57 = vld [vmem:[#allocation5 + $0xd4] ss:$8 sps:$4 sm:$0xff]  }
  0x4a   :  { %901 = vmatprep.subr.bf16.mxu0 %v1425_v19  ;;  %859 = vmatpush1.bf16.msra.mxu1 %v1424_v20  ;;  %v1475_v58 = vld [vmem:[#allocation5 + $0x1d0] ss:$8 sps:$4 sm:$0xff]   ;;  %v1479_v59 = vld [vmem:[#allocation5 + $0x1e4] ss:$8 sps:$4 sm:$0xff]   ;;  %v1481_v62 = vld [vmem:[#allocation5 + $0x1e0] ss:$8 sps:$4 sm:$0xff]  }
  0x4b   :  { %860 = vmatprep.subr.bf16.mxu1 %v1428_v21  ;;  %923 = vmatprep.mubr.bf16.mxu0 %v72_v48  ;;  %v1478_v60 = vld [vmem:[#allocation5 + $0xd0] ss:$8 sps:$4 sm:$0xff]   ;;  %v1482_v61 = vld [vmem:[#allocation5 + $0xe4] ss:$8 sps:$4 sm:$0xff]   ;;  %v1485_v63 = vld [vmem:[#allocation5 + $0x1f4] ss:$8 sps:$4 sm:$0xff]  }
  0x4c   :  { %882 = vmatprep.mubr.bf16.mxu1 %v70_v52  ;;  %v1484_v0 = vld [vmem:[#allocation5 + $0xe0] ss:$8 sps:$4 sm:$0xff]   ;;  %v1487_v1 = vld [vmem:[#allocation5 + $0x1f0] ss:$8 sps:$4 sm:$0xff]   ;;  %v1488_v2 = vld [vmem:[#allocation5 + $0xf4] ss:$8 sps:$4 sm:$0xff]  }
  0x4d   :  { %902 = vmatpush1.bf16.msra.mxu0 %v1427_v22  ;;  %v1490_v3 = vld [vmem:[#allocation5 + $0xf0] ss:$8 sps:$4 sm:$0xff]   ;;  %v1493_v5 = vld [vmem:[#allocation5 + $0x204] ss:$8 sps:$4 sm:$0xff]   ;;  %v1491_v9 = vld [vmem:[#allocation5 + $0x200] ss:$8 sps:$4 sm:$0xff]  }
  0x4e   :  { %903 = vmatprep.subr.bf16.mxu0 %v1431_v23  ;;  %861 = vmatpush1.bf16.msra.mxu1 %v1430_v24  ;;  %v63_v4 = vld [vmem:[#allocation2 + $0x10] sm:$0xff]  ;;  %v61_v6 = vld [vmem:[#allocation2] sm:$0xff]  ;;  %s1700_s8 = smov [#allocation8]  }
  0x4f   :  { %862 = vmatprep.subr.bf16.mxu1 %v1434_v25  ;;  %v71_v7 = vpack.c.bf16 %v63_v4, %v63_v4  ;;  %v1496_v8 = vld [vmem:[#allocation5 + $0x304] ss:$8 sps:$4 sm:$0xff]   ;;  %v69_v10 = vpack.c.bf16 %v61_v6, %v61_v6  ;;  %v1499_v11 = vld [vmem:[#allocation5 + $0x214] ss:$8 sps:$4 sm:$0xff]   ;;  %v1494_v12 = vld [vmem:[#allocation5 + $0x300] ss:$8 sps:$4 sm:$0xff]  }
  0x50   :  { %v1502_v13 = vld [vmem:[#allocation5 + $0x314] ss:$8 sps:$4 sm:$0xff]   ;;  %v1497_v14 = vld [vmem:[#allocation5 + $0x210] ss:$8 sps:$4 sm:$0xff]   ;;  %v1505_v15 = vld [vmem:[#allocation5 + $0x224] ss:$8 sps:$4 sm:$0xff]  }
  0x51   :  { %904 = vmatpush1.bf16.msra.mxu0 %v1433_v26  ;;  %v1500_v16 = vld [vmem:[#allocation5 + $0x310] ss:$8 sps:$4 sm:$0xff]   ;;  %v1508_v17 = vld [vmem:[#allocation5 + $0x324] ss:$8 sps:$4 sm:$0xff]   ;;  %v1503_v18 = vld [vmem:[#allocation5 + $0x220] ss:$8 sps:$4 sm:$0xff]  }
  0x52   :  { %905 = vmatprep.subr.bf16.mxu0 %v1437_v27  ;;  %863 = vmatpush1.bf16.msra.mxu1 %v1436_v28  ;;  %v1511_v19 = vld [vmem:[#allocation5 + $0x234] ss:$8 sps:$4 sm:$0xff]   ;;  %v1506_v20 = vld [vmem:[#allocation5 + $0x320] ss:$8 sps:$4 sm:$0xff]   ;;  %v1509_v22 = vld [vmem:[#allocation5 + $0x230] ss:$8 sps:$4 sm:$0xff]  }
  0x53   :  { %864 = vmatprep.subr.bf16.mxu1 %v1440_v29  ;;  %v1514_v21 = vld [vmem:[#allocation5 + $0x334] ss:$8 sps:$4 sm:$0xff]   ;;  %v1517_v23 = vld [vmem:[#allocation5 + $0x244] ss:$8 sps:$4 sm:$0xff]   ;;  %v1512_v24 = vld [vmem:[#allocation5 + $0x330] ss:$8 sps:$4 sm:$0xff]  }
  0x54   :  { %v1520_v25 = vld [vmem:[#allocation5 + $0x344] ss:$8 sps:$4 sm:$0xff]   ;;  %v1515_v26 = vld [vmem:[#allocation5 + $0x240] ss:$8 sps:$4 sm:$0xff]   ;;  %v1523_v27 = vld [vmem:[#allocation5 + $0x254] ss:$8 sps:$4 sm:$0xff]  }
  0x55   :  { %906 = vmatpush1.bf16.msra.mxu0 %v1439_v30  ;;  %v1518_v28 = vld [vmem:[#allocation5 + $0x340] ss:$8 sps:$4 sm:$0xff]   ;;  %v1526_v29 = vld [vmem:[#allocation5 + $0x354] ss:$8 sps:$4 sm:$0xff]   ;;  %v1521_v30 = vld [vmem:[#allocation5 + $0x250] ss:$8 sps:$4 sm:$0xff]  }
  0x56   :  { %907 = vmatprep.subr.bf16.mxu0 %v1443_v31  ;;  %865 = vmatpush1.bf16.msra.mxu1 %v1442_v32  ;;  %v1529_v31 = vld [vmem:[#allocation5 + $0x264] ss:$8 sps:$4 sm:$0xff]   ;;  %v68_v32 = vld [vmem:[#allocation2 + $0x38] sm:$0xff]  ;;  %v1539_v46 = vld [vmem:[#allocation5 + $0x280] ss:$8 sps:$4 sm:$0xff]   ;;  %s1200_s9 = sshll.u32 %s1700_s8, 4  ;;  %s1201_s9 = int_to_ptr.vmem [resolvable:$true] %s1200_s9 }
  0x57   :  { %866 = vmatprep.subr.bf16.mxu1 %v1446_v33  ;;  %v66_v33 = vld [vmem:[#allocation2 + $0x28] sm:$0xff]  ;;  %v1545_v50 = vld [vmem:[#allocation5 + $0x290] ss:$8 sps:$4 sm:$0xff]   ;;  %s1665_s10 = scalar_lea.vmem %s1201_s9, 128  ;;  %p1670_p11 = scmp.lt.s32.totalorder %s1201_s9, %s1201_s9 }
  0x58   :  { %v1542_v48 = vld [vmem:[#allocation5 + $0x380] ss:$8 sps:$4 sm:$0xff]   ;;  %v1548_v52 = vld [vmem:[#allocation5 + $0x390] ss:$8 sps:$4 sm:$0xff]   ;;  %v1577_v4 = vld [vmem:[#allocation5 + $0x2e4] ss:$8 sps:$4 sm:$0xff]   ;;  %p1666_p10 = scmp.ne.s32.totalorder %s1201_s9, %s1665_s10  ;;  %p1671_p12 = scmp.lt.s32.totalorder %s1665_s10, %s1665_s10 }
  0x59   :  { %908 = vmatpush1.bf16.msra.mxu0 %v1445_v34  ;;  %v1524_v34 = vld [vmem:[#allocation5 + $0x350] ss:$8 sps:$4 sm:$0xff]  }
  0x5a   :  { %909 = vmatprep.subr.bf16.mxu0 %v1449_v35  ;;  %867 = vmatpush1.bf16.msra.mxu1 %v1448_v36  ;;  %v1527_v35 = vld [vmem:[#allocation5 + $0x260] ss:$8 sps:$4 sm:$0xff]   ;;  %v1532_v36 = vld [vmem:[#allocation5 + $0x364] ss:$8 sps:$4 sm:$0xff]   ;;  %p1672_p13 = por %p1671_p12, %p1670_p11 }
  0x5b   :  { %868 = vmatprep.subr.bf16.mxu1 %v1452_v37  ;;  %v76_v37 = vpack.c.bf16 %v68_v32, %v68_v32 }
  0x5c   :  { %p1673_p0 = pnand %p1672_p13, %p1666_p10 }
  0x5d   :  { %910 = vmatpush1.bf16.msra.mxu0 %v1451_v38  ;;  %v74_v38 = vpack.c.bf16 %v66_v33, %v66_v33 }
  0x5e   :  { %911 = vmatprep.subr.bf16.mxu0 %v1455_v39  ;;  %869 = vmatpush1.bf16.msra.mxu1 %v1454_v40  ;;  %v1535_v39 = vld [vmem:[#allocation5 + $0x274] ss:$8 sps:$4 sm:$0xff]   ;;  %v1530_v40 = vld [vmem:[#allocation5 + $0x360] ss:$8 sps:$4 sm:$0xff]  }
  0x5f   :  { %870 = vmatprep.subr.bf16.mxu1 %v1458_v41  ;;  %v1538_v41 = vld [vmem:[#allocation5 + $0x374] ss:$8 sps:$4 sm:$0xff]  }
  0x61   :  { %912 = vmatpush1.bf16.msra.mxu0 %v1457_v42  ;;  %v1533_v42 = vld [vmem:[#allocation5 + $0x270] ss:$8 sps:$4 sm:$0xff]  }
  0x62   :  { %913 = vmatprep.subr.bf16.mxu0 %v1461_v43  ;;  %871 = vmatpush1.bf16.msra.mxu1 %v1460_v44  ;;  %v1541_v43 = vld [vmem:[#allocation5 + $0x284] ss:$8 sps:$4 sm:$0xff]   ;;  %v1536_v44 = vld [vmem:[#allocation5 + $0x370] ss:$8 sps:$4 sm:$0xff]  }
  0x63   :  { %872 = vmatprep.subr.bf16.mxu1 %v1464_v45  ;;  %v1544_v45 = vld [vmem:[#allocation5 + $0x384] ss:$8 sps:$4 sm:$0xff]  }
  0x65   :  { %914 = vmatpush1.bf16.msra.mxu0 %v1463_v47  ;;  %v1547_v47 = vld [vmem:[#allocation5 + $0x294] ss:$8 sps:$4 sm:$0xff]  }
  0x66   :  { %915 = vmatprep.subr.bf16.mxu0 %v1467_v49  ;;  %873 = vmatpush1.bf16.msra.mxu1 %v1466_v51  ;;  %v1550_v49 = vld [vmem:[#allocation5 + $0x394] ss:$8 sps:$4 sm:$0xff]   ;;  %v1553_v51 = vld [vmem:[#allocation5 + $0x2a4] ss:$8 sps:$4 sm:$0xff]  }
  0x67   :  { %874 = vmatprep.subr.bf16.mxu1 %v1470_v53  ;;  %v1556_v53 = vld [vmem:[#allocation5 + $0x3a4] ss:$8 sps:$4 sm:$0xff]  }
  0x69   :  { %916 = vmatpush1.bf16.msra.mxu0 %v1469_v54  ;;  %v1551_v54 = vld [vmem:[#allocation5 + $0x2a0] ss:$8 sps:$4 sm:$0xff]  }
  0x6a   :  { %917 = vmatprep.subr.bf16.mxu0 %v1473_v55  ;;  %875 = vmatpush1.bf16.msra.mxu1 %v1472_v56  ;;  %v1559_v55 = vld [vmem:[#allocation5 + $0x2b4] ss:$8 sps:$4 sm:$0xff]   ;;  %v1554_v56 = vld [vmem:[#allocation5 + $0x3a0] ss:$8 sps:$4 sm:$0xff]  }
  0x6b   :  { %876 = vmatprep.subr.bf16.mxu1 %v1476_v57  ;;  %v1562_v57 = vld [vmem:[#allocation5 + $0x3b4] ss:$8 sps:$4 sm:$0xff]  }
  0x6d   :  { %918 = vmatpush1.bf16.msra.mxu0 %v1475_v58  ;;  %v1557_v58 = vld [vmem:[#allocation5 + $0x2b0] ss:$8 sps:$4 sm:$0xff]  }
  0x6e   :  { %919 = vmatprep.subr.bf16.mxu0 %v1479_v59  ;;  %877 = vmatpush1.bf16.msra.mxu1 %v1478_v60  ;;  %v1565_v59 = vld [vmem:[#allocation5 + $0x2c4] ss:$8 sps:$4 sm:$0xff]   ;;  %v1560_v60 = vld [vmem:[#allocation5 + $0x3b0] ss:$8 sps:$4 sm:$0xff]  }
  0x6f   :  { %878 = vmatprep.subr.bf16.mxu1 %v1482_v61  ;;  %v1568_v61 = vld [vmem:[#allocation5 + $0x3c4] ss:$8 sps:$4 sm:$0xff]  }
  0x71   :  { %920 = vmatpush1.bf16.msra.mxu0 %v1481_v62  ;;  %v1563_v62 = vld [vmem:[#allocation5 + $0x2c0] ss:$8 sps:$4 sm:$0xff]  }
  0x72   :  { %921 = vmatprep.subr.bf16.mxu0 %v1485_v63  ;;  %879 = vmatpush1.bf16.msra.mxu1 %v1484_v0  ;;  %v1571_v63 = vld [vmem:[#allocation5 + $0x2d4] ss:$8 sps:$4 sm:$0xff]   ;;  %v1566_v0 = vld [vmem:[#allocation5 + $0x3c0] ss:$8 sps:$4 sm:$0xff]  }
  0x73   :  { %880 = vmatprep.subr.bf16.mxu1 %v1488_v2  ;;  %v1569_v2 = vld [vmem:[#allocation5 + $0x2d0] ss:$8 sps:$4 sm:$0xff]  }
  0x75   :  { %922 = vmatpush1.bf16.msra.mxu0 %v1487_v1  ;;  %v1574_v1 = vld [vmem:[#allocation5 + $0x3d4] ss:$8 sps:$4 sm:$0xff]  }
  0x76   :  { %932 = vmatprep.subr.bf16.mxu0 %v1493_v5  ;;  %881 = vmatpush1.bf16.msra.mxu1 %v1490_v3  ;;  %v201_v3 = vld [vmem:[#allocation5 + $0x3e0] sm:$0xff]  ;;  %v1572_v5 = vld [vmem:[#allocation5 + $0x3d0] ss:$8 sps:$4 sm:$0xff]  }
  0x77   :  { %973 = vmatprep.subr.bf16.mxu1 %v1496_v8  ;;  %v1335_v6 = vcombine.high %v201_v3, %v201_v3  ;;  %v1575_v8 = vld [vmem:[#allocation5 + $0x2e0] ss:$8 sps:$4 sm:$0xff]  }
  0x78   :  { %924 = vmatmul.mubr.bf16.vlgmr.msra.gmra.mrb[0].mxu0 %v71_v7  ;;  %v1334_v7 = vcombine.low %v201_v3, %v201_v3 }
  0x79   :  { %933 = vmatpush1.bf16.msra.mxu0 %v1491_v9  ;;  %883 = vmatmul.mubr.bf16.vlgmr.msra.gmra.mrb[0].mxu1 %v69_v10  ;;  %v1581_v9 = vld [vmem:[#allocation5 + $0x2f4] ss:$8 sps:$4 sm:$0xff]  }
  0x7a   :  { %934 = vmatprep.subr.bf16.mxu0 %v1499_v11  ;;  %974 = vmatpush1.bf16.msra.mxu1 %v1494_v12  ;;  %v67_v10 = vld [vmem:[#allocation2 + $0x30] sm:$0xff]  ;;  %v845_v11 = vsel %vm843_vm1, %v1334_v7, 0 }
  0x7b   :  { %975 = vmatprep.subr.bf16.mxu1 %v1502_v13  ;;  %1337 = vmatprep.mubr.msk.bf16.mxu1 %vm839_vm0, %v76_v37  ;;  %v1579_v12 = vld [vmem:[#allocation5 + $0x2f0] ss:$8 sps:$4 sm:$0xff]   ;;  %v65_v13 = vld [vmem:[#allocation2 + $0x20] sm:$0xff] }
  0x7c   :  { %964 = vmatprep.mubr.bf16.mxu0 %v74_v38 }
  0x7d   :  { %935 = vmatpush1.bf16.msra.mxu0 %v1497_v14  ;;  %v75_v14 = vpack.c.bf16 %v67_v10, %v67_v10 }
  0x7e   :  { %936 = vmatprep.subr.bf16.mxu0 %v1505_v15  ;;  %976 = vmatpush1.bf16.msra.mxu1 %v1500_v16  ;;  %v73_v15 = vpack.c.bf16 %v65_v13, %v65_v13  ;;  %v1583_v16 = vld [vmem:[#allocation7 + $0x40] sm:$0xff]  }
  0x7f   :  { %977 = vmatprep.subr.bf16.mxu1 %v1508_v17  ;;  %v1584_v17 = vld [vmem:[#allocation7] sm:$0xff]  }
  0x81   :  { %937 = vmatpush1.bf16.msra.mxu0 %v1503_v18  ;;  %v1585_v18 = vld [vmem:[#allocation7 + $0x48] sm:$0xff]  }
  0x82   :  { %938 = vmatprep.subr.bf16.mxu0 %v1511_v19  ;;  %978 = vmatpush1.bf16.msra.mxu1 %v1506_v20  ;;  %v1586_v19 = vld [vmem:[#allocation7 + $0x8] sm:$0xff]   ;;  %v1587_v20 = vld [vmem:[#allocation7 + $0x50] sm:$0xff]  }
  0x83   :  { %979 = vmatprep.subr.bf16.mxu1 %v1514_v21  ;;  %v1588_v21 = vld [vmem:[#allocation7 + $0x10] sm:$0xff]  }
  0x85   :  { %939 = vmatpush1.bf16.msra.mxu0 %v1509_v22  ;;  %v1589_v22 = vld [vmem:[#allocation7 + $0x58] sm:$0xff]  }
  0x86   :  { %940 = vmatprep.subr.bf16.mxu0 %v1517_v23  ;;  %980 = vmatpush1.bf16.msra.mxu1 %v1512_v24  ;;  %v1590_v23 = vld [vmem:[#allocation7 + $0x18] sm:$0xff]   ;;  %v1591_v24 = vld [vmem:[#allocation7 + $0x60] sm:$0xff]  }
  0x87   :  { %981 = vmatprep.subr.bf16.mxu1 %v1520_v25  ;;  %v1592_v25 = vld [vmem:[#allocation7 + $0x20] sm:$0xff]  }
  0x89   :  { %941 = vmatpush1.bf16.msra.mxu0 %v1515_v26  ;;  %v1593_v26 = vld [vmem:[#allocation7 + $0x68] sm:$0xff]  }
  0x8a   :  { %942 = vmatprep.subr.bf16.mxu0 %v1523_v27  ;;  %982 = vmatpush1.bf16.msra.mxu1 %v1518_v28  ;;  %v1594_v27 = vld [vmem:[#allocation7 + $0x28] sm:$0xff]   ;;  %v1595_v28 = vld [vmem:[#allocation7 + $0x70] sm:$0xff]  }
  0x8b   :  { %983 = vmatprep.subr.bf16.mxu1 %v1526_v29  ;;  %v1596_v29 = vld [vmem:[#allocation7 + $0x30] sm:$0xff]  }
  0x8d   :  { %943 = vmatpush1.bf16.msra.mxu0 %v1521_v30  ;;  %v1597_v30 = vld [vmem:[#allocation7 + $0x78] sm:$0xff]  }
  0x8e   :  { %944 = vmatprep.subr.bf16.mxu0 %v1529_v31  ;;  %984 = vmatpush1.bf16.msra.mxu1 %v1524_v34  ;;  %v1598_v31 = vld [vmem:[#allocation7 + $0x38] sm:$0xff]  }
  0x8f   :  { %985 = vmatprep.subr.bf16.mxu1 %v1532_v36  ;;  %v204_v36 = vlaneseq }
  0x91   :  { %945 = vmatpush1.bf16.msra.mxu0 %v1527_v35  ;;  %v205_v37 = vshrl.u32 %v204_v36, 7 }
  0x92   :  { %946 = vmatprep.subr.bf16.mxu0 %v1535_v39  ;;  %986 = vmatpush1.bf16.msra.mxu1 %v1530_v40  ;;  %v202_v39 = vld [vmem:[%s1787_s2] sm:$0x3] }
  0x93   :  { %987 = vmatprep.subr.bf16.mxu1 %v1538_v41  ;;  %v206_v38 = vsub.s32 0, %v205_v37  ;;  %v210_v40 = vsub.s32 1, %v205_v37 }
  0x95   :  { %947 = vmatpush1.bf16.msra.mxu0 %v1533_v42  ;;  %v207_v41 = vrot.slane %v202_v39, %v206_v38  ;;  %v211_v42 = vrot.slane %v202_v39, %v210_v40 }
  0x96   :  { %948 = vmatprep.subr.bf16.mxu0 %v1541_v43  ;;  %988 = vmatpush1.bf16.msra.mxu1 %v1536_v44 }
  0x97   :  { %989 = vmatprep.subr.bf16.mxu1 %v1544_v45 }
  0x99   :  { %949 = vmatpush1.bf16.msra.mxu0 %v1539_v46 }
  0x9a   :  { %950 = vmatprep.subr.bf16.mxu0 %v1547_v47  ;;  %990 = vmatpush1.bf16.msra.mxu1 %v1542_v48 }
  0x9b   :  { %991 = vmatprep.subr.bf16.mxu1 %v1550_v49 }
  0x9d   :  { %951 = vmatpush1.bf16.msra.mxu0 %v1545_v50 }
  0x9e   :  { %952 = vmatprep.subr.bf16.mxu0 %v1553_v51  ;;  %992 = vmatpush1.bf16.msra.mxu1 %v1548_v52 }
  0x9f   :  { %993 = vmatprep.subr.bf16.mxu1 %v1556_v53 }
  0xa1   :  { %953 = vmatpush1.bf16.msra.mxu0 %v1551_v54 }
  0xa2   :  { %954 = vmatprep.subr.bf16.mxu0 %v1559_v55  ;;  %994 = vmatpush1.bf16.msra.mxu1 %v1554_v56 }
  0xa3   :  { %995 = vmatprep.subr.bf16.mxu1 %v1562_v57 }
  0xa5   :  { %955 = vmatpush1.bf16.msra.mxu0 %v1557_v58 }
  0xa6   :  { %956 = vmatprep.subr.bf16.mxu0 %v1565_v59  ;;  %996 = vmatpush1.bf16.msra.mxu1 %v1560_v60 }
  0xa7   :  { %997 = vmatprep.subr.bf16.mxu1 %v1568_v61 }
  0xa9   :  { %957 = vmatpush1.bf16.msra.mxu0 %v1563_v62  ;;  %v1338_v62 = vld [vmem:[%s1789_s4] ss:$0 sm:$0xff] }
  0xaa   :  { %958 = vmatprep.subr.bf16.mxu0 %v1571_v63  ;;  %998 = vmatpush1.bf16.msra.mxu1 %v1566_v0 }
  0xab   :  { %999 = vmatprep.subr.bf16.mxu1 %v1574_v1 }
  0xad   :  { %959 = vmatpush1.bf16.msra.mxu0 %v1569_v2 }
  0xae   :  { %960 = vmatprep.subr.bf16.mxu0 %v1577_v4  ;;  %1000 = vmatpush1.bf16.msra.mxu1 %v1572_v5 }
  0xaf   :  { %1336 = vmatprep.subr.msk.bf16.mxu1 %vm843_vm1, %v1335_v6 }
  0xb1   :  { %961 = vmatpush1.bf16.msra.mxu0 %v1575_v8 }
  0xb2   :  { %962 = vmatprep.subr.bf16.mxu0 %v1581_v9  ;;  %1002 = vmatpush1.bf16.msra.mxu1 %v845_v11 }
  0xb3   :  { %1355 = vmatprep.subr.bf16.mxu1 %v1583_v16 }
  0xb5   :  { %963 = vmatpush1.bf16.msra.mxu0 %v1579_v12  ;;  %1006 = vmatmul.mubr.bf16.vlgmr.msra.gmra.mrb[4].mxu1 %v75_v14 }
  0xb6   :  { %1356 = vmatpush3.bf16.msra.mxu1 %v1584_v17 }
  0xb7   :  { %1357 = vmatprep.subr.bf16.mxu1 %v1585_v18 }
  0xb8   :  { %965 = vmatmul.mubr.bf16.vlgmr.msra.gmra.mrb[0].mxu0 %v73_v15 }
  0xba   :  { %1358 = vmatpush3.bf16.msra.mxu1 %v1586_v19 }
  0xbb   :  { %1359 = vmatprep.subr.bf16.mxu1 %v1587_v20 }
  0xbe   :  { %1360 = vmatpush3.bf16.msra.mxu1 %v1588_v21 }
  0xbf   :  { %1361 = vmatprep.subr.bf16.mxu1 %v1589_v22 }
  0xc2   :  { %1362 = vmatpush3.bf16.msra.mxu1 %v1590_v23 }
  0xc3   :  { %1363 = vmatprep.subr.bf16.mxu1 %v1591_v24 }
  0xc6   :  { %1364 = vmatpush3.bf16.msra.mxu1 %v1592_v25 }
  0xc7   :  { %1365 = vmatprep.subr.bf16.mxu1 %v1593_v26 }
  0xca   :  { %1366 = vmatpush3.bf16.msra.mxu1 %v1594_v27 }
  0xcb   :  { %1367 = vmatprep.subr.bf16.mxu1 %v1595_v28 }
  0xce   :  { %1368 = vmatpush3.bf16.msra.mxu1 %v1596_v29 }
  0xcf   :  { %1369 = vmatprep.subr.bf16.mxu1 %v1597_v30 }
  0xd2   :  { %1370 = vmatpush3.bf16.msra.mxu1 %v1598_v31 }
 0x14c   :  { %v884_v32 = vpop.f32.mrb[0].mxu1 }
 0x14d   :  { %v886_v33 = vpop.f32.mrb[1].mxu1  ;;  %v885_v44 = vadd.f32 %v884_v32, %v207_v41 }
 0x14e   :  { %v888_v34 = vpop.f32.mrb[2].mxu1  ;;  %v887_v46 = vadd.f32 %v886_v33, %v211_v42 }
 0x14f   :  { %v889_v35 = vpop.f32.mrb[3].mxu1 }
 0x188   :  { %v1007_v43 = vpop.f32.mrb[4].mxu1 }
 0x189   :  { %v1009_v45 = vpop.f32.mrb[5].mxu1 }
 0x18a   :  { %v1011_v48 = vpop.f32.mrb[6].mxu1 }
 0x18b   :  { %v966_v47 = vpop.f32.mrb[0].mxu0  ;;  %v1012_v51 = vpop.f32.mrb[7].mxu1 }
 0x18c   :  { %v1378_v49 = vadd.f32 %v966_v47, %v885_v44  ;;  %v968_v50 = vpop.f32.mrb[1].mxu0 }
 0x18d   :  { %v1381_v52 = vadd.f32 %v968_v50, %v887_v46  ;;  %v970_v53 = vpop.f32.mrb[2].mxu0 }
 0x18e   :  { %v1379_v54 = vadd.f32 %v1378_v49, %v1007_v43  ;;  %v971_v55 = vpop.f32.mrb[3].mxu0 }
 0x18f   :  { %v1382_v56 = vadd.f32 %v1381_v52, %v1009_v45 }
 0x190   :  { %v1014_v57 = vmax.f32 %v1379_v54, 0.0 }
 0x191   :  { %v1015_v58 = vmax.f32 %v1382_v56, 0.0 }
 0x192   :  { %v1016_v60 = vpack.c.bf16 %v1014_v57, %v1014_v57 }
 0x193   :  { %v1017_v59 = vpack.c.bf16 %v1015_v58, %v1015_v58 }
 0x195   :  { %1185 = vmatprep.mubr.bf16.mxu1 %v1017_v59 }
 0x196   :  { %1186 = vmatmul.mubr.bf16.vlgmr.msra.gmra.mrb[8].mxu1 %v1016_v60 }
 0x269   :  { %v1371_v61 = vpop.f32.mrb[8].mxu1 }
 0x26a   :  { %v1372_v63 = vpop.f32.mrb[9].mxu1 }
 0x26b   :  { %v1373_v0 = vadd.f32 %v1372_v63, %v1371_v61  ;;  %v1374_v1 = vpop.f32.mrb[10].mxu1 }
 0x26c   :  { %v1375_v2 = vpop.f32.mrb[11].mxu1 }
 0x26d   :  { %v1188_v3 = vadd.f32 %v1373_v0, %v1338_v62 }
 0x26f   :  { %1193 = vst [vmem:[#allocation8] sm:$0xff] %v1188_v3 }
 0x270   :  { %1676 = shalt.err (!%p1673_p0)
}
 0x271   :  { %s1677_s4 = scalar_lea.hbm %s1790_s5, 128 }
 0x272   :  { %p1678_p1 = scmp.ne.s32.totalorder %s1790_s5, %s1677_s4  ;;  %p1681_p2 = scmp.lt.u32.totalorder %s1677_s4, %s1790_s5 }
 0x274   :  { %p1683_p3 = pnand %p1681_p2, %p1678_p1 }
 0x276   :  { %1686 = shalt.err (!%p1683_p3)
}
 0x277   :  { %1203 = dma.vmem_to_hbm [thread:$0]  %s1201_s9, 128, %s1790_s5, [#allocation4]  }
 0x278   :  { %1691 = dma.done.wait [#allocation4], 128  }
 0x279   :  { %1692 = vsyncadd [#allocation4], 4294967168 }
 0x27a   :  { %1207 = vsyncpa [#allocation3], 1 }
 0x27b   :  { %1208 = vsyncpa [#allocation6], 1 }
 0x27c   :  { %1209 = vsyncpa [#allocation4], 1 }

</bundles_post_ra>
